<compile_context>
chip_gen: v5e
topology: v5e:2x2
jax: 0.10.0
libtpu: 0.0.40
codegen_flags: <defaults>
</compile_context>

<pallas_src>
import jax
import jax.numpy as jnp
from jax.experimental import pallas as pl
from jax.experimental.pallas import tpu as pltpu

LANES = 128


def _cdiv(a, b):
    return (a + b - 1) // b


def _round_up(x, m):
    return ((x + m - 1) // m) * m


def _num_tensorcores():
    """Best-effort TensorCores-per-chip from the device kind string."""
    kind = jax.devices()[0].device_kind.lower()
    if "lite" in kind or "v5e" in kind or "v6e" in kind:
        return 1  # v5e / v6e: one TensorCore per chip
    if "v7" in kind or "v4" in kind or "v5p" in kind:
        return 2  # v7x (and v4/v5p megacore): two TensorCores
    return 1


def _make_mlp_kernel(num_layers):
    """Kernel args: x_ref, w0, b0, ..., w_{L-1}, b_{L-1}, o_ref.

    All refs are in the lane-packed layout; weights are block-diagonal
    kron(I_P, W), so plain matmuls reproduce the per-row MLP exactly.
    Activation after layer i (i < L-1): tanh if i even else relu.
    """

    def kernel(*refs):
        x_ref = refs[0]
        o_ref = refs[-1]
        wb = refs[1:-1]

        h = x_ref[...].astype(jnp.float32)
        for i in range(num_layers):
            w = wb[2 * i][...]
            b = wb[2 * i + 1][...]
            h = jnp.dot(h, w, preferred_element_type=jnp.float32) + b
            if i < num_layers - 1:
                h = jnp.tanh(h) if i % 2 == 0 else jnp.maximum(h, 0.0)
        o_ref[...] = h.astype(o_ref.dtype)

    return kernel


def _choose_tiling(batch, pack, *, tm_max=4096, min_batch_to_split=2048):
    """Pick (packed-row tile size, number of grid steps).

    Single step unless (a) a single tile would exceed tm_max original rows or
    (b) the chip has >1 TensorCore and the batch is big enough that a
    "parallel" split actually pays for the extra pipeline step.
    """
    rows_needed = _cdiv(batch, pack)       # packed rows that carry real data
    tile_cap = max(8, tm_max // pack)      # packed rows per grid step
    steps = _cdiv(rows_needed, tile_cap)
    if batch >= min_batch_to_split:
        steps = max(steps, _num_tensorcores())
    tile_rows = _round_up(_cdiv(rows_needed, steps), 8)
    return tile_rows, steps


def pinn_ip_forward(t, weights, biases):
    """MLP forward: one fused pallas_call tiled over lane-packed batch rows.

    t:       (B, input_dim) float32
    weights: list of (in_dim, out_dim) float32
    biases:  list of (1, out_dim) float32
    """
    B, in_dim = t.shape
    num_layers = len(weights)
    out_dim = weights[-1].shape[1]

    # --- pack factor: how many batch rows share one 128-lane vreg row.
    widths = [in_dim] + [w.shape[1] for w in weights]
    pack = max(1, LANES // max(widths))

    # --- block-diagonal weights kron(I_P, W) and tiled biases (built once,
    #     outside the kernel; constant-index blocks are DMA'd once).
    eye = jnp.eye(pack, dtype=jnp.float32)
    packed_w = [jnp.kron(eye, w.astype(jnp.float32)) for w in weights]
    packed_b = [jnp.tile(b.astype(jnp.float32), (1, pack)) for b in biases]

    # --- batch tiling + zero padding for ragged batches.
    tile_rows, steps = _choose_tiling(B, pack)
    rows_total = tile_rows * steps
    b_padded = rows_total * pack
    if b_padded != B:
        t = jnp.pad(t, ((0, b_padded - B), (0, 0)))
    # Row-major reshape packs rows {r*P .. r*P+P-1} into packed row r, which
    # matches the kron(I_P, W) block ordering.
    t_packed = t.astype(jnp.float32).reshape(rows_total, pack * in_dim)

    kernel = _make_mlp_kernel(num_layers)
    out_shape = jax.ShapeDtypeStruct((rows_total, pack * out_dim), jnp.float32)

    in_specs = [pl.BlockSpec((tile_rows, pack * in_dim), lambda i: (i, 0))]
    args = [t_packed]
    for w, b in zip(packed_w, packed_b):
        in_specs.append(pl.BlockSpec(w.shape, lambda i: (0, 0)))
        in_specs.append(pl.BlockSpec(b.shape, lambda i: (0, 0)))
        args.extend([w, b])
    out_spec = pl.BlockSpec((tile_rows, pack * out_dim), lambda i: (i, 0))

    out = pl.pallas_call(
        kernel,
        out_shape=out_shape,
        grid_spec=pltpu.PrefetchScalarGridSpec(
            num_scalar_prefetch=0,
            grid=(steps,),
            in_specs=in_specs,
            out_specs=out_spec,
        ),
        compiler_params=pltpu.CompilerParams(
            dimension_semantics=("parallel",) if steps > 1 else ("arbitrary",),
        ),
    )(*args)

    # Unpack: (rows_total, P*out_dim) -> (b_padded, out_dim) -> (B, out_dim)
    return out.reshape(b_padded, out_dim)[:B]


def init_pinn_ip_params(key, input_dim, hidden_dims, output_dim):
    """Deterministic xavier_uniform_ weights, zero biases (matches __init__)."""
    dims = [input_dim] + list(hidden_dims) + [output_dim]
    weights, biases = [], []
    for i in range(len(dims) - 1):
        fan_in, fan_out = dims[i], dims[i + 1]
        key, sub = jax.random.split(key)
        bound = (6.0 / (fan_in + fan_out)) ** 0.5
        w = jax.random.uniform(
            sub, (fan_in, fan_out), minval=-bound, maxval=bound, dtype=jnp.float32
        )
        b = jnp.zeros((1, fan_out), dtype=jnp.float32)
        weights.append(w)
        biases.append(b)
    # ODE params from the ParameterDict (unused in forward()).
    ode_params = {
        "k_m": jnp.float32(1.0),
        "gamma_m": jnp.float32(1.0),
        "k_p": jnp.float32(1.0),
        "gamma_p": jnp.float32(1.0),
    }
    return weights, biases, ode_params


def _reference_forward(t, weights, biases):
    """Pure-JAX reference mirroring nn.Sequential semantics."""
    h = t
    n = len(weights)
    for i, (w, b) in enumerate(zip(weights, biases)):
        h = h @ w + b
        if i < n - 1:
            h = jnp.tanh(h) if i % 2 == 0 else jnp.maximum(h, 0.0)
    return h


if __name__ == "__main__":
    # Small shapes consistent with the module: t is (batch, input_dim=1),
    # hidden_dims alternate tanh/relu, output_dim=2 (mRNA, protein).
    # batch deliberately NOT a multiple of pack*8 to exercise the
    # ragged-batch zero-padding path; tiling yields grid=(1,) here.
    input_dim = 1
    hidden_dims = [32, 32, 32]
    output_dim = 2
    batch = 50

    key = jax.random.PRNGKey(0)
    key, tkey = jax.random.split(key)
    t = jax.random.uniform(tkey, (batch, input_dim), dtype=jnp.float32)

    weights, biases, _ode_params = init_pinn_ip_params(
        key, input_dim, hidden_dims, output_dim
    )

    out = jax.block_until_ready(pinn_ip_forward(t, weights, biases))
    ref = _reference_forward(t, weights, biases)

    assert out.shape == (batch, output_dim)
    assert jnp.allclose(out, ref, atol=1e-5, rtol=1e-5), "mismatch vs reference"

    print("KERNEL_OK")
</pallas_src>

<mosaic_0001>
module attributes {stable_mosaic.version = 11 : i64} {
  func.func @kernel(%arg0: i32, %arg1: memref<16x4xf32, #tpu.memory_space<vmem>>, %arg2: memref<4x128xf32, #tpu.memory_space<vmem>>, %arg3: memref<1x128xf32, #tpu.memory_space<vmem>>, %arg4: memref<128x128xf32, #tpu.memory_space<vmem>>, %arg5: memref<1x128xf32, #tpu.memory_space<vmem>>, %arg6: memref<128x128xf32, #tpu.memory_space<vmem>>, %arg7: memref<1x128xf32, #tpu.memory_space<vmem>>, %arg8: memref<128x8xf32, #tpu.memory_space<vmem>>, %arg9: memref<1x8xf32, #tpu.memory_space<vmem>>, %arg10: memref<16x8xf32, #tpu.memory_space<vmem>>) attributes {dimension_semantics = [#tpu.dimension_semantics<arbitrary>], iteration_bounds = array<i64: 1>, scalar_prefetch = 0 : i64, scratch_operands = 0 : i64, tpu.core_type = #tpu.core_type<tc>, window_params = [{transform_indices = @transform_0, window_bounds = array<i64: 16, 4>}, {pipeline_mode = #tpu.pipeline_mode<synchronous>, transform_indices = @transform_1, window_bounds = array<i64: 4, 128>}, {pipeline_mode = #tpu.pipeline_mode<synchronous>, transform_indices = @transform_2, window_bounds = array<i64: 1, 128>}, {pipeline_mode = #tpu.pipeline_mode<synchronous>, transform_indices = @transform_3, window_bounds = array<i64: 128, 128>}, {pipeline_mode = #tpu.pipeline_mode<synchronous>, transform_indices = @transform_4, window_bounds = array<i64: 1, 128>}, {pipeline_mode = #tpu.pipeline_mode<synchronous>, transform_indices = @transform_5, window_bounds = array<i64: 128, 128>}, {pipeline_mode = #tpu.pipeline_mode<synchronous>, transform_indices = @transform_6, window_bounds = array<i64: 1, 128>}, {pipeline_mode = #tpu.pipeline_mode<synchronous>, transform_indices = @transform_7, window_bounds = array<i64: 128, 8>}, {pipeline_mode = #tpu.pipeline_mode<synchronous>, transform_indices = @transform_8, window_bounds = array<i64: 1, 8>}, {transform_indices = @transform_9, window_bounds = array<i64: 16, 8>}]} {
    %c0 = arith.constant 0 : index
    %c0_0 = arith.constant 0 : index
    %0 = vector.load %arg1[%c0, %c0_0] : memref<16x4xf32, #tpu.memory_space<vmem>>, vector<16x4xf32>
    %c0_1 = arith.constant 0 : index
    %c0_2 = arith.constant 0 : index
    %1 = vector.load %arg2[%c0_1, %c0_2] : memref<4x128xf32, #tpu.memory_space<vmem>>, vector<4x128xf32>
    %c0_3 = arith.constant 0 : index
    %c0_4 = arith.constant 0 : index
    %2 = vector.load %arg3[%c0_3, %c0_4] : memref<1x128xf32, #tpu.memory_space<vmem>>, vector<1x128xf32>
    %cst = arith.constant dense<0.000000e+00> : vector<16x128xf32>
    %3 = tpu.matmul %0, %1, %cst {dimension_numbers = #tpu.dot_dimension_numbers<[1], [0], [0], [1], [0, 0, 1, 1], [], []>} : vector<16x4xf32>, vector<4x128xf32>, vector<16x128xf32> -> vector<16x128xf32>
    %4 = vector.broadcast %2 : vector<1x128xf32> to vector<16x128xf32>
    %5 = arith.addf %3, %4 : vector<16x128xf32>
    %6 = math.tanh %5 : vector<16x128xf32>
    %c0_5 = arith.constant 0 : index
    %c0_6 = arith.constant 0 : index
    %7 = vector.load %arg4[%c0_5, %c0_6] : memref<128x128xf32, #tpu.memory_space<vmem>>, vector<128x128xf32>
    %c0_7 = arith.constant 0 : index
    %c0_8 = arith.constant 0 : index
    %8 = vector.load %arg5[%c0_7, %c0_8] : memref<1x128xf32, #tpu.memory_space<vmem>>, vector<1x128xf32>
    %cst_9 = arith.constant dense<0.000000e+00> : vector<16x128xf32>
    %9 = tpu.matmul %6, %7, %cst_9 {dimension_numbers = #tpu.dot_dimension_numbers<[1], [0], [0], [1], [0, 0, 1, 1], [], []>} : vector<16x128xf32>, vector<128x128xf32>, vector<16x128xf32> -> vector<16x128xf32>
    %10 = vector.broadcast %8 : vector<1x128xf32> to vector<16x128xf32>
    %11 = arith.addf %9, %10 : vector<16x128xf32>
    %cst_10 = arith.constant 0.000000e+00 : f32
    %12 = vector.broadcast %cst_10 : f32 to vector<16x128xf32>
    %13 = arith.maximumf %11, %12 : vector<16x128xf32>
    %c0_11 = arith.constant 0 : index
    %c0_12 = arith.constant 0 : index
    %14 = vector.load %arg6[%c0_11, %c0_12] : memref<128x128xf32, #tpu.memory_space<vmem>>, vector<128x128xf32>
    %c0_13 = arith.constant 0 : index
    %c0_14 = arith.constant 0 : index
    %15 = vector.load %arg7[%c0_13, %c0_14] : memref<1x128xf32, #tpu.memory_space<vmem>>, vector<1x128xf32>
    %cst_15 = arith.constant dense<0.000000e+00> : vector<16x128xf32>
    %16 = tpu.matmul %13, %14, %cst_15 {dimension_numbers = #tpu.dot_dimension_numbers<[1], [0], [0], [1], [0, 0, 1, 1], [], []>} : vector<16x128xf32>, vector<128x128xf32>, vector<16x128xf32> -> vector<16x128xf32>
    %17 = vector.broadcast %15 : vector<1x128xf32> to vector<16x128xf32>
    %18 = arith.addf %16, %17 : vector<16x128xf32>
    %19 = math.tanh %18 : vector<16x128xf32>
    %c0_16 = arith.constant 0 : index
    %c0_17 = arith.constant 0 : index
    %20 = vector.load %arg8[%c0_16, %c0_17] : memref<128x8xf32, #tpu.memory_space<vmem>>, vector<128x8xf32>
    %c0_18 = arith.constant 0 : index
    %c0_19 = arith.constant 0 : index
    %21 = vector.load %arg9[%c0_18, %c0_19] : memref<1x8xf32, #tpu.memory_space<vmem>>, vector<1x8xf32>
    %cst_20 = arith.constant dense<0.000000e+00> : vector<16x8xf32>
    %22 = tpu.matmul %19, %20, %cst_20 {dimension_numbers = #tpu.dot_dimension_numbers<[1], [0], [0], [1], [0, 0, 1, 1], [], []>} : vector<16x128xf32>, vector<128x8xf32>, vector<16x8xf32> -> vector<16x8xf32>
    %23 = vector.broadcast %21 : vector<1x8xf32> to vector<16x8xf32>
    %24 = arith.addf %22, %23 : vector<16x8xf32>
    %c0_21 = arith.constant 0 : index
    %c0_22 = arith.constant 0 : index
    %25 = vector.load %arg10[%c0_21, %c0_22] : memref<16x8xf32, #tpu.memory_space<vmem>>, vector<16x8xf32>
    tpu.vector_store %arg10[%c0_21, %c0_22], %24 {strides = array<i32>} : memref<16x8xf32, #tpu.memory_space<vmem>>, vector<16x8xf32>,
    return
  }
  func.func @transform_0(%arg0: i32) -> (i32, i32) {
    %c0_i32 = arith.constant 0 : i32
    %c0_i32_0 = arith.constant 0 : i32
    return %arg0, %c0_i32 : i32, i32
  }
  func.func @transform_1(%arg0: i32) -> (i32, i32) {
    %c0_i32 = arith.constant 0 : i32
    %c0_i32_0 = arith.constant 0 : i32
    %c0_i32_1 = arith.constant 0 : i32
    return %c0_i32, %c0_i32_0 : i32, i32
  }
  func.func @transform_2(%arg0: i32) -> (i32, i32) {
    %c0_i32 = arith.constant 0 : i32
    %c0_i32_0 = arith.constant 0 : i32
    %c0_i32_1 = arith.constant 0 : i32
    return %c0_i32, %c0_i32_0 : i32, i32
  }
  func.func @transform_3(%arg0: i32) -> (i32, i32) {
    %c0_i32 = arith.constant 0 : i32
    %c0_i32_0 = arith.constant 0 : i32
    %c0_i32_1 = arith.constant 0 : i32
    return %c0_i32, %c0_i32_0 : i32, i32
  }
  func.func @transform_4(%arg0: i32) -> (i32, i32) {
    %c0_i32 = arith.constant 0 : i32
    %c0_i32_0 = arith.constant 0 : i32
    %c0_i32_1 = arith.constant 0 : i32
    return %c0_i32, %c0_i32_0 : i32, i32
  }
  func.func @transform_5(%arg0: i32) -> (i32, i32) {
    %c0_i32 = arith.constant 0 : i32
    %c0_i32_0 = arith.constant 0 : i32
    %c0_i32_1 = arith.constant 0 : i32
    return %c0_i32, %c0_i32_0 : i32, i32
  }
  func.func @transform_6(%arg0: i32) -> (i32, i32) {
    %c0_i32 = arith.constant 0 : i32
    %c0_i32_0 = arith.constant 0 : i32
    %c0_i32_1 = arith.constant 0 : i32
    return %c0_i32, %c0_i32_0 : i32, i32
  }
  func.func @transform_7(%arg0: i32) -> (i32, i32) {
    %c0_i32 = arith.constant 0 : i32
    %c0_i32_0 = arith.constant 0 : i32
    %c0_i32_1 = arith.constant 0 : i32
    return %c0_i32, %c0_i32_0 : i32, i32
  }
  func.func @transform_8(%arg0: i32) -> (i32, i32) {
    %c0_i32 = arith.constant 0 : i32
    %c0_i32_0 = arith.constant 0 : i32
    %c0_i32_1 = arith.constant 0 : i32
    return %c0_i32, %c0_i32_0 : i32, i32
  }
  func.func @transform_9(%arg0: i32) -> (i32, i32) {
    %c0_i32 = arith.constant 0 : i32
    %c0_i32_0 = arith.constant 0 : i32
    return %arg0, %c0_i32 : i32, i32
  }
}

</mosaic_0001>

<bundles_post_ra>
// kernel: tpu_custom_call.1
= control target key start
LH: loop header
LB: loop body
LE: loop exit
PB: predicated region body
PF: predicated region fallthrough
CT: control target
= control target key end

     0   :  { %14 = vsyncpa [#allocation3], 0  ;;  %s292_s12 = smov [#allocation2]   ;;  %s293_s14 = smov 128   ;;  %s473_s0 = inlined_call_operand.vmem [shape: f32[16,4], index: 0, kind: input, shape index: {}]   ;;  %s474_s1 = inlined_call_operand.vmem [shape: f32[4,128], index: 1, kind: input, shape index: {}]   ;;  %s475_s2 = inlined_call_operand.vmem [shape: f32[1,128], index: 2, kind: input, shape index: {}]   ;;  %s476_s3 = inlined_call_operand.vmem [shape: f32[128,128], index: 3, kind: input, shape index: {}]   ;;  %s477_s4 = inlined_call_operand.vmem [shape: f32[1,128], index: 4, kind: input, shape index: {}]   ;;  %s478_s5 = inlined_call_operand.hbm [shape: f32[128,128], index: 5, kind: input, shape index: {}]   ;;  %s479_s6 = inlined_call_operand.vmem [shape: f32[1,128], index: 6, kind: input, shape index: {}]   ;;  %s480_s7 = inlined_call_operand.vmem [shape: f32[128,8], index: 7, kind: input, shape index: {}]   ;;  %s481_s8 = inlined_call_operand.vmem [shape: f32[1,8], index: 8, kind: input, shape index: {}]   ;;  %s482_s9 = inlined_call_operand.vmem [shape: f32[16,8], index: 9, kind: output, shape index: {}]  }
   0x1   :  { %s29_s11 = sshll.u32 %s478_s5, 4  ;;  %s31_s13 = sshll.u32 %s292_s12, 4  ;;  %s30_s11 = int_to_ptr.hbm [resolvable:$true] %s29_s11  ;;  %s32_s13 = int_to_ptr.vmem [resolvable:$true] %s31_s13 }
   0x2   :  { %s294_s15 = smov 8  }
   0x3   :  { %37 = dma.hbm_to_vmem [thread:$0]  %s30_s11, 2048, %s32_s13, [#allocation3], %s293_s14, %s293_s14, %s294_s15  }
   0x4   :  { %290 = dma.done.wait [#allocation3], 2048  }
   0x5   :  { %291 = vsyncadd [#allocation3], 4294965248  ;;  %vm62_vm0 = vcmask 1043456   ;;  %vm55_vm1 = vcmask 31744   ;;  %v50_v0 = vld [vmem:[%s474_s1] sm:$0xf] }
   0x6   :  { %v48_v1 = vld [vmem:[%s473_s0] sm:$0xff]  ;;  %232 = vmatpush.msk.msra.mxu0 %vm62_vm0, %v50_v0  ;;  %v106_v2 = vld [vmem:[%s476_s3 + $0x78] sm:$0xff]  ;;  %v105_v3 = vld [vmem:[%s476_s3 + $0x70] sm:$0xff]  ;;  %vm224_vm2 = vcmask 64512  }
   0x7   :  { %233 = vmatmul.msk.f32.vlgmr.msra.gmra.mxu0 %vm55_vm1, %v48_v1  ;;  %235 = vmatpush.msra.mxu1 %v106_v2  ;;  %v104_v4 = vld [vmem:[%s476_s3 + $0x68] sm:$0xff]  ;;  %v103_v5 = vld [vmem:[%s476_s3 + $0x60] sm:$0xff]  ;;  %v102_v7 = vld [vmem:[%s476_s3 + $0x58] sm:$0xff] }
   0x8   :  { %111 = vmatpush.msrb.mxu0 %v106_v2  ;;  %v49_v6 = vld [vmem:[%s473_s0 + $0x8] sm:$0xff]  ;;  %v101_v8 = vld [vmem:[%s476_s3 + $0x50] sm:$0xff]  ;;  %v99_v10 = vld [vmem:[%s476_s3 + $0x40] sm:$0xff] }
   0x9   :  { %236 = vmatpush.msra.mxu1 %v105_v3  ;;  %v100_v9 = vld [vmem:[%s476_s3 + $0x48] sm:$0xff]  ;;  %v98_v11 = vld [vmem:[%s476_s3 + $0x38] sm:$0xff]  ;;  %v97_v12 = vld [vmem:[%s476_s3 + $0x30] sm:$0xff] }
   0xa   :  { %112 = vmatpush.msrb.mxu0 %v105_v3  ;;  %v96_v13 = vld [vmem:[%s476_s3 + $0x28] sm:$0xff]  ;;  %v95_v14 = vld [vmem:[%s476_s3 + $0x20] sm:$0xff]  ;;  %v94_v15 = vld [vmem:[%s476_s3 + $0x18] sm:$0xff] }
   0xb   :  { %237 = vmatpush.msra.mxu1 %v104_v4  ;;  %v93_v16 = vld [vmem:[%s476_s3 + $0x10] sm:$0xff]  ;;  %v92_v17 = vld [vmem:[%s476_s3 + $0x8] sm:$0xff]  ;;  %v91_v18 = vld [vmem:[%s476_s3] sm:$0xff] }
   0xc   :  { %113 = vmatpush.msrb.mxu0 %v104_v4  ;;  %v151_v19 = vld [vmem:[#allocation2 + $0x78] sm:$0xff]  ;;  %v150_v20 = vld [vmem:[#allocation2 + $0x70] sm:$0xff]  ;;  %v149_v21 = vld [vmem:[#allocation2 + $0x68] sm:$0xff] }
   0xd   :  { %238 = vmatpush.msra.mxu1 %v103_v5  ;;  %156 = vmatpush.msra.mxu2 %v151_v19  ;;  %v148_v22 = vld [vmem:[#allocation2 + $0x60] sm:$0xff]  ;;  %v147_v23 = vld [vmem:[#allocation2 + $0x58] sm:$0xff]  ;;  %v146_v24 = vld [vmem:[#allocation2 + $0x50] sm:$0xff] }
   0xe   :  { %114 = vmatpush.msrb.mxu0 %v103_v5  ;;  %v145_v25 = vld [vmem:[#allocation2 + $0x48] sm:$0xff]  ;;  %v254_v26 = vld [vmem:[%s475_s2] ss:$0 sm:$0xff]  ;;  %v143_v29 = vld [vmem:[#allocation2 + $0x38] sm:$0xff] }
   0xf   :  { %234 = vmatmul.msk.f32.gmra.mxu0 %vm55_vm1, %v49_v6  ;;  %239 = vmatpush.msra.mxu1 %v102_v7  ;;  %v144_v27 = vld [vmem:[#allocation2 + $0x40] sm:$0xff]  ;;  %v142_v31 = vld [vmem:[#allocation2 + $0x30] sm:$0xff]  ;;  %v141_v32 = vld [vmem:[#allocation2 + $0x28] sm:$0xff] }
  0x10   :  { %115 = vmatpush.msrb.mxu0 %v102_v7  ;;  %157 = vmatpush.msra.mxu2 %v150_v20  ;;  %v140_v33 = vld [vmem:[#allocation2 + $0x20] sm:$0xff]  ;;  %v139_v35 = vld [vmem:[#allocation2 + $0x18] sm:$0xff]  ;;  %v138_v39 = vld [vmem:[#allocation2 + $0x10] sm:$0xff] }
  0x11   :  { %240 = vmatpush.msra.mxu1 %v101_v8  ;;  %v137_v40 = vld [vmem:[#allocation2 + $0x8] sm:$0xff]  ;;  %v136_v41 = vld [vmem:[#allocation2] sm:$0xff]  ;;  %v196_v42 = vld [vmem:[%s480_s7 + $0x78] sm:$0xff] }
  0x12   :  { %116 = vmatpush.msrb.mxu0 %v101_v8  ;;  %158 = vmatpush.msra.mxu2 %v149_v21  ;;  %v195_v43 = vld [vmem:[%s480_s7 + $0x70] sm:$0xff]  ;;  %v194_v44 = vld [vmem:[%s480_s7 + $0x68] sm:$0xff]  ;;  %v193_v45 = vld [vmem:[%s480_s7 + $0x60] sm:$0xff] }
  0x13   :  { %241 = vmatpush.msra.mxu1 %v100_v9  ;;  %201 = vmatpush.msra.mxu3 %v196_v42  ;;  %v192_v46 = vld [vmem:[%s480_s7 + $0x58] sm:$0xff]  ;;  %v191_v47 = vld [vmem:[%s480_s7 + $0x50] sm:$0xff]  ;;  %v190_v48 = vld [vmem:[%s480_s7 + $0x48] sm:$0xff] }
  0x14   :  { %117 = vmatpush.msrb.mxu0 %v100_v9  ;;  %159 = vmatpush.msra.mxu2 %v148_v22  ;;  %v189_v49 = vld [vmem:[%s480_s7 + $0x40] sm:$0xff]  ;;  %v188_v50 = vld [vmem:[%s480_s7 + $0x38] sm:$0xff]  ;;  %v187_v52 = vld [vmem:[%s480_s7 + $0x30] sm:$0xff] }
  0x15   :  { %242 = vmatpush.msra.mxu1 %v99_v10  ;;  %202 = vmatpush.msra.mxu3 %v195_v43  ;;  %v255_v51 = vld [vmem:[%s477_s4] ss:$0 sm:$0xff]  ;;  %v186_v53 = vld [vmem:[%s480_s7 + $0x28] sm:$0xff]  ;;  %v184_v61 = vld [vmem:[%s480_s7 + $0x18] sm:$0xff] }
  0x16   :  { %118 = vmatpush.msrb.mxu0 %v99_v10  ;;  %160 = vmatpush.msra.mxu2 %v147_v23  ;;  %v185_v60 = vld [vmem:[%s480_s7 + $0x20] sm:$0xff]  ;;  %v183_v62 = vld [vmem:[%s480_s7 + $0x10] sm:$0xff]  ;;  %v182_v63 = vld [vmem:[%s480_s7 + $0x8] sm:$0xff] }
  0x17   :  { %243 = vmatpush.msra.mxu1 %v98_v11  ;;  %203 = vmatpush.msra.mxu3 %v194_v44  ;;  %v181_v0 = vld [vmem:[%s480_s7] sm:$0xff] }
  0x18   :  { %119 = vmatpush.msrb.mxu0 %v98_v11  ;;  %161 = vmatpush.msra.mxu2 %v146_v24  ;;  %v256_v1 = vld [vmem:[%s479_s6] ss:$0 sm:$0xff] }
  0x19   :  { %244 = vmatpush.msra.mxu1 %v97_v12  ;;  %204 = vmatpush.msra.mxu3 %v193_v45  ;;  %v257_v8 = vld [vmem:[%s481_s8] ss:$0 sm:$0xff] }
  0x1a   :  { %120 = vmatpush.msrb.mxu0 %v97_v12  ;;  %162 = vmatpush.msra.mxu2 %v145_v25 }
  0x1b   :  { %245 = vmatpush.msra.mxu1 %v96_v13  ;;  %205 = vmatpush.msra.mxu3 %v192_v46 }
  0x1c   :  { %121 = vmatpush.msrb.mxu0 %v96_v13  ;;  %163 = vmatpush.msra.mxu2 %v144_v27 }
  0x1d   :  { %246 = vmatpush.msra.mxu1 %v95_v14  ;;  %206 = vmatpush.msra.mxu3 %v191_v47 }
  0x1e   :  { %122 = vmatpush.msrb.mxu0 %v95_v14  ;;  %164 = vmatpush.msra.mxu2 %v143_v29 }
  0x1f   :  { %247 = vmatpush.msra.mxu1 %v94_v15  ;;  %207 = vmatpush.msra.mxu3 %v190_v48 }
  0x20   :  { %123 = vmatpush.msrb.mxu0 %v94_v15  ;;  %165 = vmatpush.msra.mxu2 %v142_v31 }
  0x21   :  { %248 = vmatpush.msra.mxu1 %v93_v16  ;;  %208 = vmatpush.msra.mxu3 %v189_v49 }
  0x22   :  { %124 = vmatpush.msrb.mxu0 %v93_v16  ;;  %166 = vmatpush.msra.mxu2 %v141_v32 }
  0x23   :  { %249 = vmatpush.msra.mxu1 %v92_v17  ;;  %209 = vmatpush.msra.mxu3 %v188_v50 }
  0x24   :  { %125 = vmatpush.msrb.mxu0 %v92_v17  ;;  %167 = vmatpush.msra.mxu2 %v140_v33 }
  0x25   :  { %250 = vmatpush.msra.mxu1 %v91_v18  ;;  %210 = vmatpush.msra.mxu3 %v187_v52 }
  0x26   :  { %126 = vmatpush.msrb.mxu0 %v91_v18  ;;  %168 = vmatpush.msra.mxu2 %v139_v35 }
  0x27   :  { %211 = vmatpush.msra.mxu3 %v186_v53 }
  0x28   :  { %169 = vmatpush.msra.mxu2 %v138_v39 }
  0x29   :  { %212 = vmatpush.msra.mxu3 %v185_v60 }
  0x2a   :  { %170 = vmatpush.msra.mxu2 %v137_v40 }
  0x2b   :  { %213 = vmatpush.msra.mxu3 %v184_v61 }
  0x2c   :  { %171 = vmatpush.msra.mxu2 %v136_v41 }
  0x2d   :  { %214 = vmatpush.msra.mxu3 %v183_v62 }
  0x2f   :  { %215 = vmatpush.msra.mxu3 %v182_v63 }
  0x31   :  { %216 = vmatpush.msra.mxu3 %v181_v0 }
  0x84   :  { %v83_v28 = vpop.f32.mrf.mxu0 }
  0x85   :  { %v84_v30 = vadd.f32 %v254_v26, %v83_v28 }
  0x87   :  { %258 = vtanh.f32 %v84_v30 }
  0x8c   :  { %v86_v34 = vpop.f32.mrf.mxu0 }
  0x8d   :  { %v259_v36 = vpop.eup %258  ;;  %v87_v37 = vadd.f32 %v254_v26, %v86_v34 }
  0x8e   :  { %127 = vmatmul.f32.vlgmr.msrb.gmra.mxu0 %v259_v36 }
  0x8f   :  { %260 = vtanh.f32 %v87_v37 }
  0x95   :  { %v261_v38 = vpop.eup %260 }
  0x96   :  { %130 = vmatmul.f32.vlgmr.msra.gmra.mxu1 %v261_v38 }
 0x10b   :  { %v128_v54 = vpop.f32.mrf.mxu0 }
 0x10c   :  { %v129_v55 = vadd.f32 %v255_v51, %v128_v54 }
 0x10e   :  { %v134_v56 = vmax.f32 %v129_v55, 0.0 }
 0x110   :  { %172 = vmatmul.f32.vlgmr.msra.gmra.mxu2 %v134_v56 }
 0x113   :  { %v131_v57 = vpop.f32.mrf.mxu1 }
 0x114   :  { %v132_v58 = vadd.f32 %v255_v51, %v131_v57 }
 0x116   :  { %v135_v59 = vmax.f32 %v132_v58, 0.0 }
 0x118   :  { %175 = vmatmul.f32.gmra.mxu2 %v135_v59 }
 0x193   :  { %v173_v2 = vpop.f32.mrf.mxu2 }
 0x194   :  { %v174_v3 = vadd.f32 %v256_v1, %v173_v2 }
 0x196   :  { %262 = vtanh.f32 %v174_v3 }
 0x19b   :  { %v176_v4 = vpop.f32.mrf.mxu2 }
 0x19c   :  { %v263_v5 = vpop.eup %262  ;;  %v177_v6 = vadd.f32 %v256_v1, %v176_v4 }
 0x19d   :  { %217 = vmatmul.f32.vlgmr.msra.gmra.mxu3 %v263_v5 }
 0x19e   :  { %264 = vtanh.f32 %v177_v6 }
 0x1a4   :  { %v265_v7 = vpop.eup %264 }
 0x1a5   :  { %220 = vmatmul.f32.gmra.mxu3 %v265_v7 }
 0x220   :  { %v218_v9 = vpop.f32.mrf.mxu3 }
 0x221   :  { %v219_v10 = vadd.f32 %v257_v8, %v218_v9 }
 0x223   :  { %225 = vst.msk [vmem:[%s482_s9] sm:$0xff] %vm224_vm2, %v219_v10 }
 0x228   :  { %v221_v11 = vpop.f32.mrf.mxu3 }
 0x229   :  { %v222_v12 = vadd.f32 %v257_v8, %v221_v11 }
 0x22b   :  { %226 = vst.msk [vmem:[%s482_s9 + $0x8] sm:$0xff] %vm224_vm2, %v222_v12 }
 0x22c   :  { %231 = vsyncpa [#allocation3], 1 }

</bundles_post_ra>
